<compile_context>
chip_gen: v7x
topology: tpu7x:2x2x1
jax: 0.10.0
libtpu: 0.0.40
codegen_flags: <defaults>
</compile_context>

<pallas_src>
import functools

import jax
import jax.numpy as jnp
from jax.experimental import pallas as pl
from jax.experimental.pallas import tpu as pltpu


def _round_up(n, m):
    return ((n + m - 1) // m) * m


# --------------------------------------------------------------------------
# Kernel
# --------------------------------------------------------------------------
def mapping_kernel(x_ref, we_ref, be_ref, wf_ref, bf_ref, fused_ref, laten_ref):
    # fused output layout: [0, cpad) = log-softmax(classifier), col cpad = dis
    cpad = fused_ref.shape[-1] - 128

    # ---- encoder_linear + LeakyReLU(0.2); bf16 MXU, f32 accumulation ------
    x = x_ref[...].astype(we_ref.dtype)
    h = jnp.dot(x, we_ref[...], preferred_element_type=jnp.float32) + be_ref[...]
    laten = jnp.maximum(h, 0.2 * h)          # LeakyReLU(0.2) in one VALU max
    laten_ref[...] = laten

    # ---- fused discriminator + classifier head (single lane-dense matmul) -
    logits = jnp.dot(laten.astype(wf_ref.dtype), wf_ref[...],
                     preferred_element_type=jnp.float32) + bf_ref[...]

    # classifier logits live in [0, cpad); padded columns have a -1e30 bias,
    # so exp() of them is exactly 0 and they never win the max.
    cls = logits[:, :cpad]
    m = jnp.max(cls, axis=1, keepdims=True)
    z = cls - m
    lse = jnp.log(jnp.sum(jnp.exp(z), axis=1, keepdims=True))

    # both stores are 128-lane aligned -> unmasked, lane-dense vst
    fused_ref[:, :cpad] = z - lse            # padded cols written too; sliced off outside
    fused_ref[:, cpad:] = logits[:, cpad:]   # raw discriminator logit at column `cpad`


# --------------------------------------------------------------------------
# One-time parameter preparation (layout + fusion + dtype), NOT per call
# --------------------------------------------------------------------------
def prepare_mapping_params(w_enc, b_enc, w_dis, b_dis, w_cls, b_cls,
                           *, compute_dtype=jnp.bfloat16):
    """Convert PyTorch-layout (out,in) params to kernel-ready form once."""
    L, R = w_enc.shape
    C = w_cls.shape[0]
    CPAD = _round_up(C, 128)           # classifier columns padded to 128-multiple
    NF = CPAD + 128                    # + one 128-lane block holding the dis column

    we = jnp.asarray(w_enc).T.astype(compute_dtype)            # (R, L)
    be = jnp.asarray(b_enc).reshape(1, L).astype(jnp.float32)

    wf = jnp.zeros((L, NF), compute_dtype)
    wf = wf.at[:, :C].set(jnp.asarray(w_cls).T.astype(compute_dtype))
    wf = wf.at[:, CPAD].set(jnp.asarray(w_dis).reshape(L).astype(compute_dtype))

    bf = jnp.full((1, NF), -1e30, jnp.float32)   # kills padded logits in softmax
    bf = bf.at[0, :C].set(jnp.asarray(b_cls).astype(jnp.float32))
    bf = bf.at[0, CPAD].set(jnp.asarray(b_dis).reshape(()).astype(jnp.float32))

    return {"we": we, "be": be, "wf": wf, "bf": bf, "n_class": C}


# --------------------------------------------------------------------------
# Forward wrapper
# --------------------------------------------------------------------------
@functools.partial(jax.jit, static_argnames=("n_class", "block_b"))
def mapping_forward(x, we, be, wf, bf, *, n_class, block_b=256):
    """x: (B, R) f32/bf16; we/wf in (in,out) layout from prepare_mapping_params."""
    B, R = x.shape
    L = we.shape[1]
    NF = wf.shape[1]
    CPAD = NF - 128

    # batch tile: multiple of 8 (sublane), capped by block_b; pad B if needed
    TB = max(8, min(block_b, _round_up(B, 8)))
    TB = _round_up(TB, 8)
    Bp = _round_up(B, TB)
    if Bp != B:
        x = jnp.pad(x, ((0, Bp - B), (0, 0)))

    fused_p, laten_p = pl.pallas_call(
        mapping_kernel,
        grid=(Bp // TB,),
        in_specs=[
            pl.BlockSpec((TB, R), lambda i: (i, 0)),    # x tile (streamed)
            pl.BlockSpec((R, L), lambda i: (0, 0)),     # W_enc^T (resident)
            pl.BlockSpec((1, L), lambda i: (0, 0)),     # b_enc   (resident)
            pl.BlockSpec((L, NF), lambda i: (0, 0)),    # fused head weights
            pl.BlockSpec((1, NF), lambda i: (0, 0)),    # fused head bias
        ],
        out_specs=[
            pl.BlockSpec((TB, NF), lambda i: (i, 0)),   # [log-softmax | dis] fused
            pl.BlockSpec((TB, L), lambda i: (i, 0)),    # laten
        ],
        out_shape=[
            jax.ShapeDtypeStruct((Bp, NF), jnp.float32),
            jax.ShapeDtypeStruct((Bp, L), jnp.float32),
        ],
        compiler_params=pltpu.CompilerParams(
            dimension_semantics=("parallel",),          # shard batch across TCs
            vmem_limit_bytes=48 * 1024 * 1024,          # explicit, fits v7x 64 MiB
        ),
    )(x, we, be, wf, bf)

    # wrapper-side slicing: pure layout plumbing on small arrays
    dis_out = fused_p[:B, CPAD:CPAD + 1]
    pred = fused_p[:B, :n_class]
    laten = laten_p[:B]
    # TODO(synk): if `laten` is unused downstream, add a variant that skips
    # materializing it to HBM (pure bandwidth saving).
    return dis_out, pred, laten


# --------------------------------------------------------------------------
# Parameter init (weights_init: Linear weight ~ N(0, 0.02), bias = 0)
# --------------------------------------------------------------------------
def init_mapping_params(key, res_size, laten_size, nclass_seen):
    k1, k2, k3 = jax.random.split(key, 3)
    w_enc = 0.02 * jax.random.normal(k1, (laten_size, res_size), jnp.float32)
    b_enc = jnp.zeros((laten_size,), jnp.float32)
    w_dis = 0.02 * jax.random.normal(k2, (1, laten_size), jnp.float32)
    b_dis = jnp.zeros((1,), jnp.float32)
    w_cls = 0.02 * jax.random.normal(k3, (nclass_seen, laten_size), jnp.float32)
    b_cls = jnp.zeros((nclass_seen,), jnp.float32)
    # NOTE: classifier2 / sigmoid exist in __init__ but are unused in forward; omitted.
    return w_enc, b_enc, w_dis, b_dis, w_cls, b_cls


if __name__ == "__main__":
    # small shapes consistent with the module (resSize->256, latenSize->128,
    # nclass_seen->32); batch=12 + block_b=8 exercises tiling AND batch padding.
    B, RES, LAT, NCLS = 12, 256, 128, 32

    key = jax.random.PRNGKey(0)
    kx, kp = jax.random.split(key)
    x = jax.random.normal(kx, (B, RES), jnp.float32)
    raw = init_mapping_params(kp, RES, LAT, NCLS)

    params = prepare_mapping_params(*raw)      # one-time layout/dtype prep
    dis_out, pred, laten = mapping_forward(
        x, params["we"], params["be"], params["wf"], params["bf"],
        n_class=params["n_class"], block_b=8)
    jax.block_until_ready((dis_out, pred, laten))

    # f32 reference (PyTorch module semantics)
    w_enc, b_enc, w_dis, b_dis, w_cls, b_cls = raw
    h = x @ w_enc.T + b_enc
    laten_ref = jnp.where(h > 0, h, 0.2 * h)
    dis_ref = laten_ref @ w_dis.T + b_dis
    pred_ref = jax.nn.log_softmax(laten_ref @ w_cls.T + b_cls, axis=1)

    assert dis_out.shape == (B, 1) and pred.shape == (B, NCLS) and laten.shape == (B, LAT)
    # bf16 weights/activations with f32 accumulation -> loose-but-safe tolerances
    assert jnp.allclose(laten, laten_ref, atol=3e-2, rtol=3e-2), "laten mismatch"
    assert jnp.allclose(dis_out, dis_ref, atol=3e-2, rtol=3e-2), "dis_out mismatch"
    assert jnp.allclose(pred, pred_ref, atol=3e-2, rtol=3e-2), "pred mismatch"

    print("KERNEL_OK")
</pallas_src>

<mosaic_0001>
module attributes {stable_mosaic.version = 11 : i64} {
  func.func @mapping_kernel(%arg0: i32, %arg1: memref<8x256xf32, #tpu.memory_space<vmem>>, %arg2: memref<256x128xbf16, #tpu.memory_space<vmem>>, %arg3: memref<1x128xf32, #tpu.memory_space<vmem>>, %arg4: memref<128x256xbf16, #tpu.memory_space<vmem>>, %arg5: memref<1x256xf32, #tpu.memory_space<vmem>>, %arg6: memref<8x256xf32, #tpu.memory_space<vmem>>, %arg7: memref<8x128xf32, #tpu.memory_space<vmem>>) attributes {dimension_semantics = [#tpu.dimension_semantics<parallel>], iteration_bounds = array<i64: 2>, scalar_prefetch = 0 : i64, scratch_operands = 0 : i64, tpu.core_type = #tpu.core_type<tc>, window_params = [{transform_indices = @transform_0, window_bounds = array<i64: 8, 256>}, {pipeline_mode = #tpu.pipeline_mode<synchronous>, transform_indices = @transform_1, window_bounds = array<i64: 256, 128>}, {pipeline_mode = #tpu.pipeline_mode<synchronous>, transform_indices = @transform_2, window_bounds = array<i64: 1, 128>}, {pipeline_mode = #tpu.pipeline_mode<synchronous>, transform_indices = @transform_3, window_bounds = array<i64: 128, 256>}, {pipeline_mode = #tpu.pipeline_mode<synchronous>, transform_indices = @transform_4, window_bounds = array<i64: 1, 256>}, {transform_indices = @transform_5, window_bounds = array<i64: 8, 256>}, {transform_indices = @transform_6, window_bounds = array<i64: 8, 128>}]} {
    %c0 = arith.constant 0 : index
    %c0_0 = arith.constant 0 : index
    %0 = vector.load %arg1[%c0, %c0_0] : memref<8x256xf32, #tpu.memory_space<vmem>>, vector<8x256xf32>
    %1 = arith.truncf %0 : vector<8x256xf32> to vector<8x256xbf16>
    %c0_1 = arith.constant 0 : index
    %c0_2 = arith.constant 0 : index
    %2 = vector.load %arg2[%c0_1, %c0_2] : memref<256x128xbf16, #tpu.memory_space<vmem>>, vector<256x128xbf16>
    %cst = arith.constant dense<0.000000e+00> : vector<8x128xf32>
    %3 = tpu.matmul %1, %2, %cst {dimension_numbers = #tpu.dot_dimension_numbers<[1], [0], [0], [1], [0, 0, 1, 1], [], []>} : vector<8x256xbf16>, vector<256x128xbf16>, vector<8x128xf32> -> vector<8x128xf32>
    %c0_3 = arith.constant 0 : index
    %c0_4 = arith.constant 0 : index
    %4 = vector.load %arg3[%c0_3, %c0_4] : memref<1x128xf32, #tpu.memory_space<vmem>>, vector<1x128xf32>
    %5 = vector.broadcast %4 : vector<1x128xf32> to vector<8x128xf32>
    %6 = arith.addf %3, %5 : vector<8x128xf32>
    %cst_5 = arith.constant 2.000000e-01 : f32
    %7 = vector.broadcast %cst_5 : f32 to vector<8x128xf32>
    %8 = arith.mulf %7, %6 : vector<8x128xf32>
    %9 = arith.maximumf %6, %8 : vector<8x128xf32>
    %c0_6 = arith.constant 0 : index
    %c0_7 = arith.constant 0 : index
    %10 = vector.load %arg7[%c0_6, %c0_7] : memref<8x128xf32, #tpu.memory_space<vmem>>, vector<8x128xf32>
    tpu.vector_store %arg7[%c0_6, %c0_7], %9 {strides = array<i32>} : memref<8x128xf32, #tpu.memory_space<vmem>>, vector<8x128xf32>,
    %11 = arith.truncf %9 : vector<8x128xf32> to vector<8x128xbf16>
    %c0_8 = arith.constant 0 : index
    %c0_9 = arith.constant 0 : index
    %12 = vector.load %arg4[%c0_8, %c0_9] : memref<128x256xbf16, #tpu.memory_space<vmem>>, vector<128x256xbf16>
    %cst_10 = arith.constant dense<0.000000e+00> : vector<8x256xf32>
    %13 = tpu.matmul %11, %12, %cst_10 {dimension_numbers = #tpu.dot_dimension_numbers<[1], [0], [0], [1], [0, 0, 1, 1], [], []>} : vector<8x128xbf16>, vector<128x256xbf16>, vector<8x256xf32> -> vector<8x256xf32>
    %c0_11 = arith.constant 0 : index
    %c0_12 = arith.constant 0 : index
    %14 = vector.load %arg5[%c0_11, %c0_12] : memref<1x256xf32, #tpu.memory_space<vmem>>, vector<1x256xf32>
    %15 = vector.broadcast %14 : vector<1x256xf32> to vector<8x256xf32>
    %16 = arith.addf %13, %15 : vector<8x256xf32>
    %17 = vector.extract_strided_slice %16 {offsets = [0, 0], sizes = [8, 128], strides = [1, 1]} : vector<8x256xf32> to vector<8x128xf32>
    %cst_13 = arith.constant dense<0xFF800000> : vector<8xf32>
    %18 = vector.multi_reduction <maximumf>, %17, %cst_13 [1] : vector<8x128xf32> to vector<8xf32>
    %19 = vector.shape_cast %18 : vector<8xf32> to vector<8x1xf32>
    %20 = vector.broadcast %19 : vector<8x1xf32> to vector<8x128xf32>
    %21 = arith.subf %17, %20 : vector<8x128xf32>
    %22 = math.exp %21 : vector<8x128xf32>
    %cst_14 = arith.constant dense<0.000000e+00> : vector<8xf32>
    %23 = vector.multi_reduction <add>, %22, %cst_14 [1] : vector<8x128xf32> to vector<8xf32>
    %24 = vector.shape_cast %23 : vector<8xf32> to vector<8x1xf32>
    %25 = math.log %24 : vector<8x1xf32>
    %26 = vector.broadcast %25 : vector<8x1xf32> to vector<8x128xf32>
    %27 = arith.subf %21, %26 : vector<8x128xf32>
    %c0_15 = arith.constant 0 : index
    %c0_16 = arith.constant 0 : index
    %28 = vector.load %arg6[%c0_15, %c0_16] : memref<8x256xf32, #tpu.memory_space<vmem>>, vector<8x128xf32>
    tpu.vector_store %arg6[%c0_15, %c0_16], %27 {strides = array<i32>} : memref<8x256xf32, #tpu.memory_space<vmem>>, vector<8x128xf32>,
    %29 = vector.extract_strided_slice %16 {offsets = [0, 128], sizes = [8, 128], strides = [1, 1]} : vector<8x256xf32> to vector<8x128xf32>
    %c0_17 = arith.constant 0 : index
    %c128 = arith.constant 128 : index
    %30 = vector.load %arg6[%c0_17, %c128] : memref<8x256xf32, #tpu.memory_space<vmem>>, vector<8x128xf32>
    tpu.vector_store %arg6[%c0_17, %c128], %29 {strides = array<i32>} : memref<8x256xf32, #tpu.memory_space<vmem>>, vector<8x128xf32>,
    return
  }
  func.func @transform_0(%arg0: i32) -> (i32, i32) {
    %c0_i32 = arith.constant 0 : i32
    %c0_i32_0 = arith.constant 0 : i32
    return %arg0, %c0_i32 : i32, i32
  }
  func.func @transform_1(%arg0: i32) -> (i32, i32) {
    %c0_i32 = arith.constant 0 : i32
    %c0_i32_0 = arith.constant 0 : i32
    %c0_i32_1 = arith.constant 0 : i32
    return %c0_i32, %c0_i32_0 : i32, i32
  }
  func.func @transform_2(%arg0: i32) -> (i32, i32) {
    %c0_i32 = arith.constant 0 : i32
    %c0_i32_0 = arith.constant 0 : i32
    %c0_i32_1 = arith.constant 0 : i32
    return %c0_i32, %c0_i32_0 : i32, i32
  }
  func.func @transform_3(%arg0: i32) -> (i32, i32) {
    %c0_i32 = arith.constant 0 : i32
    %c0_i32_0 = arith.constant 0 : i32
    %c0_i32_1 = arith.constant 0 : i32
    return %c0_i32, %c0_i32_0 : i32, i32
  }
  func.func @transform_4(%arg0: i32) -> (i32, i32) {
    %c0_i32 = arith.constant 0 : i32
    %c0_i32_0 = arith.constant 0 : i32
    %c0_i32_1 = arith.constant 0 : i32
    return %c0_i32, %c0_i32_0 : i32, i32
  }
  func.func @transform_5(%arg0: i32) -> (i32, i32) {
    %c0_i32 = arith.constant 0 : i32
    %c0_i32_0 = arith.constant 0 : i32
    return %arg0, %c0_i32 : i32, i32
  }
  func.func @transform_6(%arg0: i32) -> (i32, i32) {
    %c0_i32 = arith.constant 0 : i32
    %c0_i32_0 = arith.constant 0 : i32
    return %arg0, %c0_i32 : i32, i32
  }
}

</mosaic_0001>

<bundles_post_ra>
// kernel: mapping_forward.1
= control target key start
LH: loop header
LB: loop body
LE: loop exit
PB: predicated region body
PF: predicated region fallthrough
CT: control target
= control target key end

     0   :  { %12 = vsyncpa [#allocation3], 0  ;;  %s1313_s0 = inlined_call_operand.vmem [shape: f32[16,256], index: 0, kind: input, shape index: {}]   ;;  %s1314_s1 = inlined_call_operand.hbm [shape: bf16[256,128], index: 1, kind: input, shape index: {}]   ;;  %s1315_s2 = inlined_call_operand.vmem [shape: f32[1,128], index: 2, kind: input, shape index: {}]   ;;  %s1316_s3 = inlined_call_operand.hbm [shape: bf16[128,256], index: 3, kind: input, shape index: {}]   ;;  %s1317_s4 = inlined_call_operand.vmem [shape: f32[1,256], index: 4, kind: input, shape index: {}]   ;;  %s1318_s5 = inlined_call_operand.vmem [shape: f32[16,256], index: 5, kind: output, shape index: {0}]   ;;  %s1319_s6 = inlined_call_operand.hbm [shape: f32[16,128], index: 6, kind: output, shape index: {1}]  }
   0x1   :  { %13 = vsyncpa [#allocation6], 0 }
   0x2   :  { %14 = vsyncpa [#allocation4], 0 }
   0x3   :  { %16 = vsyncpa [#allocation4 + $0x1], 0  ;;  %s1120_s21 = smov 0   ;;  %s1122_s22 = smov 0  }
   0x4   :  { %s1124_s23 = smov 0   ;;  %s1126_s24 = smov 0  }
   0x5 LB: > { %s1141_s25 = sadd.s32 4294967295, %s1075_s24   ;;  %s766_s26 = sadd.s32 4294967294, %s1075_s24   ;;  %s1075_s24 = sphi %s1126_s24, %s1337_s24   ;;  %s1071_s23 = sphi %s1124_s23, %s1336_s23   ;;  %s1067_s22 = sphi %s1122_s22, %s1335_s22   ;;  %s1063_s21 = sphi %s1120_s21, %s1334_s21  }
   0x6   : > { %s1145_s27 = sadd.s32 1, %s1075_s24   ;;  %s165_s28 = sadd.s32 1, %s1071_s23 }
   0x7   : > { %s162_s29 = ssub.s32 %s1075_s24, %s1145_s27  ;;  %p175_p0 = scmp.ne.s32.totalorder %s1071_s23, %s1067_s22 }
   0x8   : > { %p163_p1 = scmp.eq.s32.totalorder %s162_s29, 0  ;;  %p176_p2 = scmp.eq.s32.totalorder %s1141_s25, 1 }
   0x9   : > { %p181_p3 = scmp.ne.s32.totalorder %s1067_s22, %s1063_s21  ;;  %p182_p4 = scmp.eq.s32.totalorder %s766_s26, 1 }
   0xa   : > { %s1156_s30 = scalar_select %p163_p1, %s1071_s23, %s165_s28  }
   0xb   : > { %p1158_p5 = por %p176_p2, %p175_p0  ;;  %p1162_p6 = por %p182_p4, %p181_p3 }
   0xc   : > { %p767_p7 = scmp.ge.s32.totalorder %s1075_s24, 1  ;;  %p189_p8 = scmp.lt.s32.totalorder %s1075_s24, 3 }
   0xd   : > { %s1323_s7 = scalar_select %p1158_p5, 1, 0 }
   0xe   : > { %s1324_s8 = scalar_select %p1162_p6, 1, 0 }
   0xf   : > { %p1320_p9 = scmp.eq.s32.totalorder %s1141_s25, 0  ;;  %p1169_p10 = pnand %p767_p7, %p189_p8 }
  0x10   : > { %s1077_s10 = smov [#allocation2]   ;;  %s1078_s13 = smov [#allocation5]  }
  0x11   : > { %s1325_s9 = scalar_select %p1169_p10, 1, 0 }
  0x12   : > { %s201_s11 = sshll.u32 %s1077_s10, 4  ;;  %p850_p11 = pneg %p1169_p10  ;;  %s202_s11 = int_to_ptr.vmem [resolvable:$true] %s201_s11 }
  0x13   : > { %s217_s14 = sshll.u32 %s1078_s13, 4  ;;  %s949_s17 = scalar_lea.hbm %s1314_s1, 2048  ;;  %s1181_s14 = int_to_ptr.vmem [resolvable:$true] %s217_s14 }
  0x14   : > { %p1177_p12 = pnand %p1320_p9, %p850_p11  ;;  %p950_p13 = scmp.ne.s32.totalorder %s1314_s1, %s949_s17 }
  0x15   : > { %p956_p3 = scmp.lt.u32.totalorder %s949_s17, %s1314_s1 }
  0x16   : > { %p951_p0 = pneg %p1177_p12 }
  0x18   : > { %p952_p1 = pnand %p951_p0, %p950_p13 }
  0x1a   : > { %p953_p2 = pneg %p952_p1 }
  0x1c   : > { %p958_p4 = pnand %p956_p3, %p953_p2 }
  0x1e   : > { %961 = shalt.err (!%p958_p4)
}
  0x1f   : > { %s962_s28 = scalar_lea.vmem %s202_s11, 2048  ;;  %p970_p9 = scmp.lt.s32.totalorder %s202_s11, %s202_s11 }
  0x20   : > { %p963_p7 = scmp.ne.s32.totalorder %s202_s11, %s962_s28  ;;  %p971_p6 = scmp.lt.s32.totalorder %s962_s28, %s962_s28 }
  0x22   : > { %p965_p8 = pnand %p963_p7, %p951_p0  ;;  %p972_p5 = por %p971_p6, %p970_p9 }
  0x24   : > { %p966_p11 = pneg %p965_p8 }
  0x26   : > { %p973_p10 = pnand %p972_p5, %p966_p11 }
  0x28   : > { %976 = shalt.err (!%p973_p10)
}
  0x29   : > { %s1079_s29 = smov 64   ;;  %s1080_s10 = smov 4  }
  0x2a   : > { %853 = dma.hbm_to_vmem [thread:$0]  (!%p1177_p12), %s1314_s1, 2048, %s202_s11, [#allocation3], %s1079_s29, %s1079_s29, %s1080_s10  }
  0x2b   : > { %s977_s18 = scalar_lea.hbm %s1316_s3, 2048 }
  0x2c   : > { %p978_p13 = scmp.ne.s32.totalorder %s1316_s3, %s977_s18  ;;  %p984_p9 = scmp.lt.u32.totalorder %s977_s18, %s1316_s3 }
  0x2e   : > { %p980_p5 = pnand %p978_p13, %p951_p0 }
  0x30   : > { %p981_p6 = pneg %p980_p5 }
  0x32   : > { %p986_p10 = pnand %p984_p9, %p981_p6 }
  0x34   : > { %989 = shalt.err (!%p986_p10)
}
  0x35   : > { %s990_s11 = scalar_lea.vmem %s1181_s14, 2048  ;;  %p998_p4 = scmp.lt.s32.totalorder %s1181_s14, %s1181_s14 }
  0x36   : > { %p991_p1 = scmp.ne.s32.totalorder %s1181_s14, %s990_s11  ;;  %p999_p7 = scmp.lt.s32.totalorder %s990_s11, %s990_s11 }
  0x38   : > { %p993_p2 = pnand %p991_p1, %p951_p0  ;;  %p1000_p8 = por %p999_p7, %p998_p4 }
  0x3a   : > { %p994_p3 = pneg %p993_p2 }
  0x3c   : > { %p1001_p11 = pnand %p1000_p8, %p994_p3 }
  0x3e   : > { %1004 = shalt.err (!%p1001_p11)
}
  0x3f   : > { %s1081_s29 = smov 128   ;;  %s1082_s10 = smov 8  }
  0x40   : > { %856 = dma.hbm_to_vmem [thread:$0]  (!%p1177_p12), %s1316_s3, 2048, %s1181_s14, [#allocation6], %s1081_s29, %s1081_s29, %s1082_s10  }
  0x41   : > { %p1327_p13 = scmp.ne.s32.totalorder %s1325_s9, 0 }
  0x42   : > { %p1328_p0 = scmp.eq.s32.totalorder (!%p1327_p13), %s1141_s25, 0 }
  0x43   : > { %244 = sbr.rel (%p1327_p13) target bundleno = 863 (0x35f), region = 40 }
  0x4a   : > { %1050 = dma.done.wait (%p1328_p0), [#allocation3], 2048   ;;  %p1329_p5 = pmov %p1328_p0 }
  0x4b   : > { %p1330_p6 = pmov %p1328_p0 }
  0x4c   : > { %1052 = vsyncadd (%p1329_p5), [#allocation3], 4294965248 }
  0x4d   : > { %1054 = dma.done.wait (%p1330_p6), [#allocation6], 2048   ;;  %p1331_p9 = pmov %p1328_p0 }
  0x4e   : > { %v905_v0 = vld [vmem:[#allocation2 + $0x40] sm:$0xff]   ;;  %v907_v2 = vld [vmem:[#allocation2 + $0x48] sm:$0xff]   ;;  %p283_p12 = scmp.lt.s32.totalorder %s1141_s25, 1  ;;  %v909_v4 = vld [vmem:[#allocation2 + $0x50] sm:$0xff]   ;;  %v1083_v36 = vmov 0   ;;  %s280_s20 = sand.u32 1, %s1067_s22   ;;  %v495_v47 = vlaneseq }
  0x4f   : > { %1056 = vsyncadd (%p1331_p9), [#allocation6], 4294965248  ;;  %v906_v1 = vld [vmem:[#allocation2] sm:$0xff]   ;;  %818 = vmatprep.subr.bf16.mxu0 %v905_v0  ;;  %v908_v3 = vld [vmem:[#allocation2 + $0x8] sm:$0xff]   ;;  %617 = vmatprep.mubr.bf16.mxu1 %v1083_v36  ;;  %s1256_s26 = sshll.u32 %s280_s20, 3  ;;  %s644_s18 = scalar_lea.sflag [#allocation4], %s280_s20 }
  0x50   : > { %819 = vmatpush3.bf16.msra.mxu0 %v906_v1  ;;  %s1242_s9 = scalar_select %p283_p12, %s1141_s25, 1  ;;  %v910_v5 = vld [vmem:[#allocation2 + $0x10] sm:$0xff]   ;;  %v911_v6 = vld [vmem:[#allocation2 + $0x58] sm:$0xff]   ;;  %v913_v8 = vld [vmem:[#allocation2 + $0x60] sm:$0xff]   ;;  %v496_v48 = vshrl.u32 %v495_v47, 7 }
  0x51   : > { %820 = vmatprep.subr.bf16.mxu0 %v907_v2  ;;  %v912_v7 = vld [vmem:[#allocation2 + $0x18] sm:$0xff]   ;;  %v914_v9 = vld [vmem:[#allocation2 + $0x20] sm:$0xff]   ;;  %v915_v10 = vld [vmem:[#allocation2 + $0x68] sm:$0xff]   ;;  %s282_s28 = scalar_lea.vmem [#allocation7], %s1256_s26  ;;  %p1332_p1 = scmp.ne.s32.totalorder %s1323_s7, 0 }
  0x52   : > { %s816_s12 = sshll.u32 %s1242_s9, 4  ;;  %v921_v13 = vld [vmem:[#allocation5 + $0x4] ss:$8 sps:$4 sm:$0xff]   ;;  %v923_v14 = vld [vmem:[#allocation5] ss:$8 sps:$4 sm:$0xff]   ;;  %v917_v17 = vld [vmem:[#allocation2 + $0x70] sm:$0xff]  }
  0x53   : > { %s287_s17 = scalar_lea.vmem %s1313_s0, %s816_s12  ;;  %v924_v15 = vld [vmem:[#allocation5 + $0x14] ss:$8 sps:$4 sm:$0xff]   ;;  %v916_v16 = vld [vmem:[#allocation2 + $0x28] sm:$0xff]   ;;  %585 = vmatprep.subr.bf16.mxu1 %v921_v13  ;;  %v926_v19 = vld [vmem:[#allocation5 + $0x10] ss:$8 sps:$4 sm:$0xff]   ;;  %v497_v49 = vsub.s32 0, %v496_v48  ;;  %s1267_s15 = scalar_lea.vmem %s1318_s5, %s816_s12 }
  0x54   : > { %821 = vmatpush3.bf16.msra.mxu0 %v908_v3  ;;  %v295_v11 = vld [vmem:[%s287_s17 + $0x8] sm:$0xff]  ;;  %v918_v18 = vld [vmem:[#allocation2 + $0x30] sm:$0xff]   ;;  %586 = vmatpush1.bf16.msra.mxu1 %v923_v14  ;;  %v919_v21 = vld [vmem:[#allocation2 + $0x78] sm:$0xff]   ;;  %v501_v51 = vsub.s32 1, %v496_v48  ;;  %s813_s9 = sshll.u32 %s1141_s25, 7  ;;  %s660_s14 = sshll.u32 %s282_s28, 4  ;;  %s661_s14 = int_to_ptr.vmem [resolvable:$true] %s660_s14 }
  0x55   : > { %822 = vmatprep.subr.bf16.mxu0 %v909_v4  ;;  %v297_v12 = vpack.c.bf16 %v295_v11, %v295_v11  ;;  %587 = vmatprep.subr.bf16.mxu1 %v924_v15  ;;  %v927_v20 = vld [vmem:[#allocation5 + $0x24] ss:$8 sps:$4 sm:$0xff]   ;;  %v929_v22 = vld [vmem:[#allocation5 + $0x20] ss:$8 sps:$4 sm:$0xff]   ;;  %v930_v23 = vld [vmem:[#allocation5 + $0x34] ss:$8 sps:$4 sm:$0xff]  }
  0x56   : > { %v920_v24 = vld [vmem:[#allocation2 + $0x38] sm:$0xff]   ;;  %v294_v25 = vld [vmem:[%s287_s17] sm:$0xff]  ;;  %s1274_s17 = scalar_lea.hbm %s1319_s6, %s813_s9  ;;  %s1005_s19 = scalar_lea.vmem %s661_s14, 128 }
  0x57   : > { %465 = vmatprep.mubr.bf16.mxu0 %v297_v12  ;;  %v932_v26 = vld [vmem:[#allocation5 + $0x30] ss:$8 sps:$4 sm:$0xff]   ;;  %v296_v27 = vpack.c.bf16 %v294_v25, %v294_v25  ;;  %v933_v28 = vld [vmem:[#allocation5 + $0x44] ss:$8 sps:$4 sm:$0xff]   ;;  %v935_v29 = vld [vmem:[#allocation5 + $0x40] ss:$8 sps:$4 sm:$0xff]   ;;  %p1006_p10 = scmp.ne.s32.totalorder %s661_s14, %s1005_s19 }
  0x58   : > { %823 = vmatpush3.bf16.msra.mxu0 %v910_v5  ;;  %588 = vmatpush1.bf16.msra.mxu1 %v926_v19  ;;  %v936_v30 = vld [vmem:[#allocation5 + $0x54] ss:$8 sps:$4 sm:$0xff]   ;;  %v938_v31 = vld [vmem:[#allocation5 + $0x50] ss:$8 sps:$4 sm:$0xff]   ;;  %v939_v32 = vld [vmem:[#allocation5 + $0x64] ss:$8 sps:$4 sm:$0xff]  }
  0x59   : > { %824 = vmatprep.subr.bf16.mxu0 %v911_v6  ;;  %589 = vmatprep.subr.bf16.mxu1 %v927_v20  ;;  %v941_v33 = vld [vmem:[#allocation5 + $0x60] ss:$8 sps:$4 sm:$0xff]   ;;  %v942_v34 = vld [vmem:[#allocation5 + $0x74] ss:$8 sps:$4 sm:$0xff]   ;;  %v944_v35 = vld [vmem:[#allocation5 + $0x70] ss:$8 sps:$4 sm:$0xff]   ;;  %p1007_p2 = pnand %p1006_p10, %p1332_p1 }
  0x5a   : > { %v779_v38 = vld [vmem:[%s1315_s2] ss:$0 sm:$0xff]  ;;  %s1084_s26 = smov [#allocation7]  }
  0x5b   : > { %v493_v50 = vld [vmem:[%s1317_s4] sm:$0x3]  ;;  %p1008_p3 = pneg %p1007_p2  ;;  %s1009_s11 = sshll.u32 %s1084_s26, 4  ;;  %s1010_s11 = int_to_ptr.vmem [resolvable:$false] %s1009_s11 }
  0x5c   : > { %825 = vmatpush3.bf16.msra.mxu0 %v912_v7  ;;  %590 = vmatpush1.bf16.msra.mxu1 %v929_v22  ;;  %v498_v52 = vrot.slane %v493_v50, %v497_v49  ;;  %v502_v53 = vrot.slane %v493_v50, %v501_v51  ;;  %s1011_s29 = scalar_lea.vmem %s1010_s11, 256  ;;  %p1012_p4 = scmp.lt.s32.totalorder %s661_s14, %s1010_s11 }
  0x5d   : > { %826 = vmatprep.subr.bf16.mxu0 %v913_v8  ;;  %591 = vmatprep.subr.bf16.mxu1 %v930_v23  ;;  %p1013_p7 = scmp.lt.s32.totalorder %s1011_s29, %s1005_s19 }
  0x5f   : > { %p1014_p8 = por %p1013_p7, %p1012_p4 }
  0x60   : > { %827 = vmatpush3.bf16.msra.mxu0 %v914_v9  ;;  %592 = vmatpush1.bf16.msra.mxu1 %v932_v26 }
  0x61   : > { %828 = vmatprep.subr.bf16.mxu0 %v915_v10  ;;  %593 = vmatprep.subr.bf16.mxu1 %v933_v28  ;;  %p1015_p11 = pnand %p1014_p8, %p1008_p3 }
  0x64   : > { %829 = vmatpush3.bf16.msra.mxu0 %v916_v16  ;;  %594 = vmatpush1.bf16.msra.mxu1 %v935_v29 }
  0x65   : > { %830 = vmatprep.subr.bf16.mxu0 %v917_v17  ;;  %595 = vmatprep.subr.bf16.mxu1 %v936_v30 }
  0x68   : > { %831 = vmatpush3.bf16.msra.mxu0 %v918_v18  ;;  %596 = vmatpush1.bf16.msra.mxu1 %v938_v31 }
  0x69   : > { %832 = vmatprep.subr.bf16.mxu0 %v919_v21  ;;  %597 = vmatprep.subr.bf16.mxu1 %v939_v32 }
  0x6c   : > { %833 = vmatpush3.bf16.msra.mxu0 %v920_v24  ;;  %598 = vmatpush1.bf16.msra.mxu1 %v941_v33 }
  0x6d   : > { %599 = vmatprep.subr.bf16.mxu1 %v942_v34 }
  0x6f   : > { %466 = vmatmul.mubr.bf16.vlgmr.msra.gmra.mrb[0].mxu0 %v296_v27 }
  0x70   : > { %600 = vmatpush1.bf16.msra.mxu1 %v944_v35 }
 0x142   : > { %v834_v37 = vpop.f32.mrb[0].mxu0 }
 0x143   : > { %v835_v39 = vpop.f32.mrb[1].mxu0 }
 0x144   : > { %v836_v40 = vadd.f32 %v835_v39, %v834_v37  ;;  %v837_v41 = vpop.f32.mrb[2].mxu0 }
 0x145   : > { %v838_v42 = vpop.f32.mrb[3].mxu0 }
 0x146   : > { %v468_v43 = vadd.f32 %v836_v40, %v779_v38 }
 0x148   : > { %v473_v44 = vmul.f32 0.2, %v468_v43 }
 0x14a   : > { %v474_v45 = vmax.f32 %v468_v43, %v473_v44 }
 0x14c   : > { %v476_v46 = vpack.c.bf16 %v474_v45, %v474_v45  ;;  %475 = vst [vmem:[%s282_s28] sm:$0xff] %v474_v45 }
 0x14e   : > { %618 = vmatmul.mubr.bf16.vlgmr.msra.gmra.mrb[0].mxu1 %v476_v46 }
 0x221   : > { %v619_v54 = vpop.f32.mrb[0].mxu1 }
 0x222   : > { %v620_v55 = vadd.f32 %v619_v54, %v498_v52  ;;  %v621_v56 = vpop.f32.mrb[1].mxu1 }
 0x223   : > { %v622_v57 = vadd.f32 %v621_v56, %v502_v53  ;;  %v623_v58 = vpop.f32.mrb[2].mxu1 }
 0x224   : > { %v624_v59 = vpop.f32.mrb[3].mxu1  ;;  %626 = vmax.xlane.f32.xlu0 %v620_v55 }
 0x225   : > { %637 = vst [vmem:[%s1267_s15 + $0x8] sm:$0xff] %v622_v57 }
 0x2b1   : > { %v627_v60 = vpop.xlane.xlu0 %626 }
 0x2b2   : > { %v628_v61 = vsub.f32 %v620_v55, %v627_v60 }
 0x2b4   : > { %v629_v62 = vmul.f32 1.442695, %v628_v61 }
 0x2b6   : > { %945 = vpow2.f32 %v629_v62 }
 0x2c0   : > { %v946_v63 = vpop.eup %945 }
 0x2c1   : > { %631 = vadd.xlane.f32.xlu0 %v946_v63 }
 0x2c2   : > { %1018 = shalt.err (!%p1015_p11)
}
 0x2c3   : > { %s1019_s25 = scalar_lea.hbm %s1274_s17, 128  ;;  %s1023_s10 = scalar_lea.hbm %s1319_s6, 256 }
 0x2c4   : > { %p1020_p13 = scmp.ne.s32.totalorder %s1274_s17, %s1019_s25  ;;  %p1024_p6 = scmp.lt.u32.totalorder %s1274_s17, %s1319_s6 }
 0x2c5   : > { %p1025_p9 = scmp.lt.u32.totalorder %s1023_s10, %s1019_s25  ;;  %p1027_p10 = scmp.lt.u32.totalorder %s1019_s25, %s1274_s17 }
 0x2c6   : > { %p1021_p0 = pnand %p1020_p13, %p1332_p1 }
 0x2c7   : > { %p1026_p12 = por %p1025_p9, %p1024_p6 }
 0x2c8   : > { %p1022_p5 = pneg %p1021_p0 }
 0x2c9   : > { %p1028_p2 = por %p1027_p10, %p1026_p12 }
 0x2cb   : > { %p1029_p3 = pnand %p1028_p2, %p1022_p5 }
 0x2cd   : > { %1032 = shalt.err (!%p1029_p3)
}
 0x2ce   : > { %848 = dma.vmem_to_hbm [thread:$0]  (%p1332_p1), %s661_s14, 128, %s1274_s17, %s644_s18  }
 0x34e   : > { %v632_v0 = vpop.xlane.xlu0 %631 }
 0x34f   : > { %947 = vlog2.f32 %v632_v0 }
 0x359   : > { %v948_v1 = vpop.eup %947 }
 0x35a   : > { %v634_v2 = vmul.f32 0.6931472, %v948_v1 }
 0x35c   : > { %v635_v3 = vsub.f32 %v628_v61, %v634_v2 }
 0x35e   : > { %636 = vst [vmem:[%s1267_s15] sm:$0xff] %v635_v3 }
 0x35f PF: > { %p865_p4 = scmp.ge.s32.totalorder %s1075_s24, 2  ;;  %s680_s12 = sand.u32 1, %s1063_s21  }
 0x360   : > { %p1333_p7 = scmp.ne.s32.totalorder %s1324_s8, 0  ;;  %s681_s16 = scalar_lea.sflag [#allocation4], %s680_s12 }
 0x362   : > { %p858_p8 = pnand %p865_p4, %p1333_p7 }
 0x364   : > { %1058 = dma.done.wait (!%p858_p8), %s681_s16, 128  }
 0x365   : > { %1060 = vsyncadd (!%p858_p8), %s681_s16, 4294967168  ;;  %p19_p1 = scmp.ge.s32.totalorder %s1145_s27, 4   ;;  %s1334_s21 = smov %s1067_s22 }
 0x366   : > { %s1335_s22 = smov %s1071_s23  ;;  %s1336_s23 = smov %s1156_s30 }
 0x367   : > { %s1337_s24 = smov %s1145_s27  ;;  %21 = sbr.rel (!%p19_p1) target bundleno = 5 (0x5), region = 96 }
 0x36e   :  { %686 = vsyncpa [#allocation3], 1 }
 0x36f   :  { %688 = vsyncpa [#allocation3 + $0x1], 1 }
 0x370   :  { %689 = vsyncpa [#allocation6], 1 }
 0x371   :  { %690 = vsyncpa [#allocation4], 1 }
 0x372   :  { %692 = vsyncpa [#allocation4 + $0x1], 1 }

</bundles_post_ra>
